<compile_context>
chip_gen: v7x
topology: tpu7x:2x2x1
jax: 0.10.0
libtpu: 0.0.40
codegen_flags: <defaults>
</compile_context>

<pallas_src>
import numpy as np
import jax
import jax.numpy as jnp
from jax.experimental import pallas as pl
from jax.experimental.pallas import tpu as pltpu


def _denorm_kernel(mean_ref, std_ref, x_ref, o_ref):
    # x block: (rows_tile, L); mean/std blocks: (rows_tile, 1) -> broadcast
    # along lanes. Pure VPU mul+add; HBM bandwidth is the binding resource.
    o_ref[...] = x_ref[...] * std_ref[...] + mean_ref[...]


def _pick_rows_tile(rows_total, lane_len, itemsize):
    """Pick a row-tile so each block is ~2 MiB, keeping the double-buffered
    working set (2 in + 2 out blocks) well under the scoped-VMEM default on
    all of v5e / v6e / v7x."""
    target_block_bytes = 2 * 1024 * 1024
    rows = max(1, target_block_bytes // max(1, lane_len * itemsize))
    if rows >= rows_total:
        return rows_total
    # Sublane multiple: 8 for fp32, 16 for bf16, 32 for int8/fp8.
    sub = 8 * max(1, 4 // itemsize)
    rows = max(sub, (rows // sub) * sub)
    return min(rows, rows_total)


def denormalize(x, mean, std):
    """x: (N, C, H, W); mean, std: (C,) — returns x * std[c] + mean[c]."""
    N, C, H, W = x.shape
    mean = jnp.asarray(mean, dtype=x.dtype)
    std = jnp.asarray(std, dtype=x.dtype)

    # Mirror the PyTorch std==0 check on the host (numpy). If std is a traced
    # value (e.g. under jax.jit), skip it — no device round-trip on the hot path.
    try:
        std_host = np.asarray(std)
    except Exception:  # traced value under jit
        std_host = None
    if std_host is not None and np.any(std_host == 0):
        raise ValueError(
            "std evaluated to zero after conversion to {}, leading to division "
            "by zero.".format(x.dtype)
        )

    rows_total = N * C
    L = H * W
    itemsize = jnp.dtype(x.dtype).itemsize

    # Lane-dense 2-D view: rows = (n, c) planes, lanes = flattened H*W.
    x2d = x.reshape(rows_total, L)
    # Row r = n*C + c  ->  channel c = r % C, so tile the (C,) tables N times.
    mean_rows = jnp.tile(mean, N).reshape(rows_total, 1)
    std_rows = jnp.tile(std, N).reshape(rows_total, 1)

    rows_tile = _pick_rows_tile(rows_total, L, itemsize)
    grid = (pl.cdiv(rows_total, rows_tile),)

    out2d = pl.pallas_call(
        _denorm_kernel,
        out_shape=jax.ShapeDtypeStruct((rows_total, L), x.dtype),
        grid=grid,
        in_specs=[
            pl.BlockSpec((rows_tile, 1), lambda i: (i, 0)),   # mean rows
            pl.BlockSpec((rows_tile, 1), lambda i: (i, 0)),   # std rows
            pl.BlockSpec((rows_tile, L), lambda i: (i, 0)),   # x
        ],
        out_specs=pl.BlockSpec((rows_tile, L), lambda i: (i, 0)),
        compiler_params=pltpu.CompilerParams(
            dimension_semantics=("parallel",),
        ),
    )(mean_rows, std_rows, x2d)

    return out2d.reshape(N, C, H, W)


if __name__ == "__main__":
    key = jax.random.PRNGKey(0)
    N, C, H, W = 2, 4, 16, 16
    x = jax.random.normal(key, (N, C, H, W), dtype=jnp.float32)

    # Deterministic per-channel mean / std (ImageNet-style constants).
    mean = jnp.array([0.485, 0.456, 0.406, 0.5], dtype=jnp.float32)
    std = jnp.array([0.229, 0.224, 0.225, 0.25], dtype=jnp.float32)

    out = denormalize(x, mean, std)
    out = jax.block_until_ready(out)

    # Reference check against plain JAX broadcasting.
    ref = x * std[None, :, None, None] + mean[None, :, None, None]
    assert jnp.allclose(out, ref, atol=1e-6), "mismatch vs reference"
    print("KERNEL_OK")
</pallas_src>

<mosaic_0001>
module attributes {stable_mosaic.version = 11 : i64} {
  func.func @_denorm_kernel(%arg0: i32, %arg1: memref<8x1xf32, #tpu.memory_space<vmem>>, %arg2: memref<8x1xf32, #tpu.memory_space<vmem>>, %arg3: memref<8x256xf32, #tpu.memory_space<vmem>>, %arg4: memref<8x256xf32, #tpu.memory_space<vmem>>) attributes {dimension_semantics = [#tpu.dimension_semantics<parallel>], iteration_bounds = array<i64: 1>, scalar_prefetch = 0 : i64, scratch_operands = 0 : i64, tpu.core_type = #tpu.core_type<tc>, window_params = [{transform_indices = @transform_0, window_bounds = array<i64: 8, 1>}, {transform_indices = @transform_1, window_bounds = array<i64: 8, 1>}, {transform_indices = @transform_2, window_bounds = array<i64: 8, 256>}, {transform_indices = @transform_3, window_bounds = array<i64: 8, 256>}]} {
    %c0 = arith.constant 0 : index
    %c0_0 = arith.constant 0 : index
    %0 = vector.load %arg3[%c0, %c0_0] : memref<8x256xf32, #tpu.memory_space<vmem>>, vector<8x256xf32>
    %c0_1 = arith.constant 0 : index
    %c0_2 = arith.constant 0 : index
    %1 = vector.load %arg2[%c0_1, %c0_2] : memref<8x1xf32, #tpu.memory_space<vmem>>, vector<8x1xf32>
    %2 = vector.broadcast %1 : vector<8x1xf32> to vector<8x256xf32>
    %3 = arith.mulf %0, %2 : vector<8x256xf32>
    %c0_3 = arith.constant 0 : index
    %c0_4 = arith.constant 0 : index
    %4 = vector.load %arg1[%c0_3, %c0_4] : memref<8x1xf32, #tpu.memory_space<vmem>>, vector<8x1xf32>
    %5 = vector.broadcast %4 : vector<8x1xf32> to vector<8x256xf32>
    %6 = arith.addf %3, %5 : vector<8x256xf32>
    %c0_5 = arith.constant 0 : index
    %c0_6 = arith.constant 0 : index
    %7 = vector.load %arg4[%c0_5, %c0_6] : memref<8x256xf32, #tpu.memory_space<vmem>>, vector<8x256xf32>
    tpu.vector_store %arg4[%c0_5, %c0_6], %6 {strides = array<i32>} : memref<8x256xf32, #tpu.memory_space<vmem>>, vector<8x256xf32>,
    return
  }
  func.func @transform_0(%arg0: i32) -> (i32, i32) {
    %c0_i32 = arith.constant 0 : i32
    %c0_i32_0 = arith.constant 0 : i32
    return %arg0, %c0_i32 : i32, i32
  }
  func.func @transform_1(%arg0: i32) -> (i32, i32) {
    %c0_i32 = arith.constant 0 : i32
    %c0_i32_0 = arith.constant 0 : i32
    return %arg0, %c0_i32 : i32, i32
  }
  func.func @transform_2(%arg0: i32) -> (i32, i32) {
    %c0_i32 = arith.constant 0 : i32
    %c0_i32_0 = arith.constant 0 : i32
    return %arg0, %c0_i32 : i32, i32
  }
  func.func @transform_3(%arg0: i32) -> (i32, i32) {
    %c0_i32 = arith.constant 0 : i32
    %c0_i32_0 = arith.constant 0 : i32
    return %arg0, %c0_i32 : i32, i32
  }
}

</mosaic_0001>

<bundles_post_ra>
// kernel: tpu_custom_call.1
= control target key start
LH: loop header
LB: loop body
LE: loop exit
PB: predicated region body
PF: predicated region fallthrough
CT: control target
= control target key end

     0   :  { %s122_s0 = inlined_call_operand.vmem [shape: f32[8,1], index: 0, kind: input, shape index: {}]   ;;  %s123_s1 = inlined_call_operand.vmem [shape: f32[8,1], index: 1, kind: input, shape index: {}]   ;;  %s124_s2 = inlined_call_operand.vmem [shape: f32[8,256], index: 2, kind: input, shape index: {}]   ;;  %s125_s3 = inlined_call_operand.hbm [shape: f32[8,256], index: 3, kind: output, shape index: {}]  }
   0x1   :  { %v17_v0 = vld [vmem:[%s123_s1] sm:$0xff] }
   0x2   :  { %8 = vsyncpa [#allocation3], 0  ;;  %v76_v1 = vmov 0   ;;  %v25_v2 = vld [vmem:[%s122_s0] sm:$0xff]  ;;  %v16_v5 = vld [vmem:[%s124_s2 + $0x8] sm:$0xff]  ;;  %s77_s20 = smov [#allocation2]  }
   0x3   :  { %51 = vset.pattern.permute.xlu0 %v76_v1  ;;  %v15_v4 = vld [vmem:[%s124_s2] sm:$0xff]  ;;  %s41_s1 = sshll.u32 %s77_s20, 4  ;;  %s42_s1 = int_to_ptr.vmem [resolvable:$true] %s41_s1 }
   0x4   :  { %20 = vperm.xlu0 %51, %v17_v0   ;;  %s52_s0 = scalar_lea.vmem %s42_s1, 256  ;;  %p57_p1 = scmp.lt.s32.totalorder %s42_s1, %s42_s1 }
   0x5   :  { %p53_p0 = scmp.ne.s32.totalorder %s42_s1, %s52_s0  ;;  %p58_p2 = scmp.lt.s32.totalorder %s52_s0, %s52_s0 }
   0x7   :  { %p59_p3 = por %p58_p2, %p57_p1 }
   0x8   :  { %28 = vperm.xlu0 %51, %v25_v2  }
   0x9   :  { %p60_p4 = pnand %p59_p3, %p53_p0 }
  0x83   :  { %v21_v3 = vpop.permute.xlu0 %20 }
  0x84   :  { %v23_v6 = vmul.f32 %v21_v3, %v15_v4  ;;  %v24_v7 = vmul.f32 %v21_v3, %v16_v5 }
  0x87   :  { %v29_v8 = vpop.permute.xlu0 %28 }
  0x88   :  { %v31_v9 = vadd.f32 %v29_v8, %v23_v6  ;;  %v32_v10 = vadd.f32 %v29_v8, %v24_v7 }
  0x8a   :  { %33 = vst [vmem:[#allocation2] sm:$0xff] %v31_v9  ;;  %34 = vst [vmem:[#allocation2 + $0x8] sm:$0xff] %v32_v10 }
  0x8b   :  { %63 = shalt.err (!%p60_p4)
}
  0x8c   :  { %s64_s2 = scalar_lea.hbm %s125_s3, 256 }
  0x8d   :  { %p65_p5 = scmp.ne.s32.totalorder %s125_s3, %s64_s2  ;;  %p68_p6 = scmp.lt.u32.totalorder %s64_s2, %s125_s3 }
  0x8f   :  { %p70_p7 = pnand %p68_p6, %p65_p5 }
  0x91   :  { %73 = shalt.err (!%p70_p7)
}
  0x92   :  { %44 = dma.vmem_to_hbm [thread:$0]  %s42_s1, 256, %s125_s3, [#allocation3]  }
  0x93   :  { %74 = dma.done.wait [#allocation3], 256  }
  0x94   :  { %75 = vsyncadd [#allocation3], 4294967040 }
  0x95   :  { %48 = vsyncpa [#allocation3], 1 }

</bundles_post_ra>
